<compile_context>
chip_gen: v7x
topology: tpu7x:2x2x1
jax: 0.10.0
libtpu: 0.0.40
codegen_flags: <defaults>
</compile_context>

<pallas_src>
import jax
import jax.numpy as jnp
from jax.experimental import pallas as pl
from jax.experimental.pallas import tpu as pltpu


def _round_up(x, m):
    return ((x + m - 1) // m) * m


def _resnet_kernel(z_ref,
                   w1_ref, b1_ref,
                   w2_ref, b2_ref,
                   w3_ref, b3_ref,
                   w4_ref, b4_ref,
                   o_ref):
    """One row-tile of the fused 4-block ResNet forward.

    z_ref : (tile_rows, d_pad)  input tile (io dtype)
    wX_ref: (d_pad, d_pad)      weight, transposed to (in, out), compute dtype
    bX_ref: (1, d_pad)          bias, f32
    o_ref : (tile_rows, d_pad)  output tile (io dtype)
    """
    # Residual chain lives in f32 on the VPU; only matmul operands are
    # (possibly) bf16 so the MXU runs at full rate with f32 accumulation.
    z = z_ref[...].astype(jnp.float32)

    def res_block(z, w_ref, b_ref):
        h = jnp.dot(z.astype(w_ref.dtype), w_ref[...],
                    preferred_element_type=jnp.float32)
        h = h + b_ref[...]                  # (1, d) broadcasts over rows, f32
        return z + jnp.maximum(h, 0.0)      # ReLU then residual add, f32

    z = res_block(z, w1_ref, b1_ref)
    z = res_block(z, w2_ref, b2_ref)
    z = res_block(z, w3_ref, b3_ref)
    z = res_block(z, w4_ref, b4_ref)

    o_ref[...] = z.astype(o_ref.dtype)


def _build_call(n_rows_p, d_pad, tile_rows, io_dtype, compute_dtype,
                single_buffer_weights):
    """Construct the pallas_call for a given padded problem size."""
    resident_kwargs = {}
    if single_buffer_weights:
        # Constant index_map -> the block never changes; double-buffering the
        # resident weights/biases only burns VMEM (critical on v7x, 64 MiB).
        resident_kwargs = dict(pipeline_mode=pl.Buffered(1))

    w_spec = pl.BlockSpec((d_pad, d_pad), lambda i: (0, 0), **resident_kwargs)
    b_spec = pl.BlockSpec((1, d_pad), lambda i: (0, 0), **resident_kwargs)
    row_spec = pl.BlockSpec((tile_rows, d_pad), lambda i: (i, 0))

    in_specs = [row_spec]
    for _ in range(4):
        in_specs += [w_spec, b_spec]

    # Scoped-VMEM budget: resident weights/biases (x pipeline buffers),
    # double-buffered input/output row tiles, plus f32 in-kernel temporaries.
    wb = 1 if single_buffer_weights else 2
    w_bytes = 4 * d_pad * d_pad * jnp.dtype(compute_dtype).itemsize * wb
    b_bytes = 4 * d_pad * 4 * wb
    io_bytes = 2 * 2 * tile_rows * d_pad * jnp.dtype(io_dtype).itemsize
    tmp_bytes = 3 * tile_rows * d_pad * 4
    est = w_bytes + b_bytes + io_bytes + tmp_bytes
    vmem_limit = int(min(max(2 * est, 32 << 20), 64 << 20))  # <= v7x physical

    return pl.pallas_call(
        _resnet_kernel,
        out_shape=jax.ShapeDtypeStruct((n_rows_p, d_pad), io_dtype),
        grid_spec=pltpu.PrefetchScalarGridSpec(
            num_scalar_prefetch=0,
            grid=(n_rows_p // tile_rows,),
            in_specs=in_specs,
            out_specs=row_spec,
        ),
        compiler_params=pltpu.CompilerParams(
            dimension_semantics=("parallel",),  # row tiles shard across TCs
            vmem_limit_bytes=vmem_limit,
        ),
    )


def resnet_forward(z, params, *, tile_rows=256, compute_dtype=jnp.bfloat16):
    """Fused ResNet forward.

    z      : (..., d_model), any leading dims (as in the PyTorch module).
    params : list of 4 (W, b) pairs in torch nn.Linear layout: W (out, in), b (out,).
    """
    orig_shape = z.shape
    d_model = orig_shape[-1]
    z2d = z.reshape(-1, d_model)
    n_rows = z2d.shape[0]
    io_dtype = z.dtype

    # Feature-dim padding: lane-dense blocks, unmasked stores, full MXU K/N.
    d_pad = _round_up(d_model, 128)

    # Row tiling: big tiles, clamped to the padded row count; rows zero-padded
    # so any batch*seq works (no divisibility requirement).
    row_mult = 16 if io_dtype in (jnp.bfloat16, jnp.float16) else 8
    tile_rows = max(row_mult,
                    min(_round_up(tile_rows, row_mult),
                        _round_up(n_rows, row_mult)))
    n_rows_p = _round_up(n_rows, tile_rows)

    z_p = jnp.zeros((n_rows_p, d_pad), io_dtype).at[:n_rows, :d_model].set(z2d)

    flat_params = []
    for (w, b) in params:
        # nn.Linear stores W as (out, in); the kernel wants (in, out), zero-
        # padded and pre-cast to the MXU compute dtype (bf16 by default ->
        # half the DMA bytes / VMEM residency, full-rate MXU). Bias stays f32
        # since the epilogue math is f32 on the VPU.
        w_t = jnp.zeros((d_pad, d_pad), compute_dtype).at[:d_model, :d_model].set(
            w.T.astype(compute_dtype))
        b_p = jnp.zeros((1, d_pad), jnp.float32).at[0, :d_model].set(
            b.astype(jnp.float32))
        flat_params += [w_t, b_p]

    try:
        call = _build_call(n_rows_p, d_pad, tile_rows, io_dtype, compute_dtype,
                           single_buffer_weights=True)
        out_p = call(z_p, *flat_params)
    except Exception:
        # pipeline_mode=pl.Buffered(1) unsupported on this jax build/backend:
        # fall back to default (double-buffered) resident weights.
        call = _build_call(n_rows_p, d_pad, tile_rows, io_dtype, compute_dtype,
                           single_buffer_weights=False)
        out_p = call(z_p, *flat_params)

    return out_p[:n_rows, :d_model].reshape(orig_shape)


def init_params(key, d_model, dtype=jnp.float32):
    """PyTorch-layout params: list of 4 (W (out, in), b (out,)) pairs."""
    params = []
    bound = 1.0 / float(d_model) ** 0.5
    for _ in range(4):
        key, kw, kb = jax.random.split(key, 3)
        w = jax.random.uniform(kw, (d_model, d_model), dtype, -bound, bound)
        b = jax.random.uniform(kb, (d_model,), dtype, -bound, bound)
        params.append((w, b))
    return params


def resnet_reference(z, params):
    """Pure-JAX reference replicating the PyTorch forward exactly."""
    for (w, b) in params:
        z = z + jnp.maximum(z @ w.T + b, 0.0)
    return z


if __name__ == "__main__":
    d_model = 32
    seq, batch = 8, 2              # z: (seq, batch, d_model), typical deepsvg usage

    key = jax.random.PRNGKey(0)
    key, kz = jax.random.split(key)
    z = jax.random.normal(kz, (seq, batch, d_model), dtype=jnp.float32)

    params = init_params(key, d_model)
    ref = resnet_reference(z, params)

    # Default (fast) path: bf16 MXU operands, f32 accumulation/residual chain.
    out_bf16 = jax.block_until_ready(
        resnet_forward(z, params, tile_rows=256, compute_dtype=jnp.bfloat16))
    assert out_bf16.shape == ref.shape == z.shape
    assert jnp.allclose(out_bf16, ref, atol=5e-2, rtol=5e-2), \
        "bf16-compute kernel mismatch vs reference"

    # f32 compute path: exact match against the PyTorch-equivalent reference.
    out_f32 = jax.block_until_ready(
        resnet_forward(z, params, tile_rows=256, compute_dtype=jnp.float32))
    assert jnp.allclose(out_f32, ref, atol=1e-5, rtol=1e-5), \
        "f32-compute kernel mismatch vs reference"

    print("KERNEL_OK")
</pallas_src>

<mosaic_0001>
module attributes {stable_mosaic.version = 11 : i64} {
  func.func @_resnet_kernel(%arg0: i32, %arg1: memref<16x128xf32, #tpu.memory_space<vmem>>, %arg2: memref<128x128xbf16, #tpu.memory_space<vmem>>, %arg3: memref<1x128xf32, #tpu.memory_space<vmem>>, %arg4: memref<128x128xbf16, #tpu.memory_space<vmem>>, %arg5: memref<1x128xf32, #tpu.memory_space<vmem>>, %arg6: memref<128x128xbf16, #tpu.memory_space<vmem>>, %arg7: memref<1x128xf32, #tpu.memory_space<vmem>>, %arg8: memref<128x128xbf16, #tpu.memory_space<vmem>>, %arg9: memref<1x128xf32, #tpu.memory_space<vmem>>, %arg10: memref<16x128xf32, #tpu.memory_space<vmem>>) attributes {dimension_semantics = [#tpu.dimension_semantics<parallel>], iteration_bounds = array<i64: 1>, scalar_prefetch = 0 : i64, scratch_operands = 0 : i64, tpu.core_type = #tpu.core_type<tc>, window_params = [{transform_indices = @transform_0, window_bounds = array<i64: 16, 128>}, {pipeline_mode = #tpu.pipeline_mode<synchronous>, transform_indices = @transform_1, window_bounds = array<i64: 128, 128>}, {pipeline_mode = #tpu.pipeline_mode<synchronous>, transform_indices = @transform_2, window_bounds = array<i64: 1, 128>}, {pipeline_mode = #tpu.pipeline_mode<synchronous>, transform_indices = @transform_3, window_bounds = array<i64: 128, 128>}, {pipeline_mode = #tpu.pipeline_mode<synchronous>, transform_indices = @transform_4, window_bounds = array<i64: 1, 128>}, {pipeline_mode = #tpu.pipeline_mode<synchronous>, transform_indices = @transform_5, window_bounds = array<i64: 128, 128>}, {pipeline_mode = #tpu.pipeline_mode<synchronous>, transform_indices = @transform_6, window_bounds = array<i64: 1, 128>}, {pipeline_mode = #tpu.pipeline_mode<synchronous>, transform_indices = @transform_7, window_bounds = array<i64: 128, 128>}, {pipeline_mode = #tpu.pipeline_mode<synchronous>, transform_indices = @transform_8, window_bounds = array<i64: 1, 128>}, {transform_indices = @transform_9, window_bounds = array<i64: 16, 128>}]} {
    %c0 = arith.constant 0 : index
    %c0_0 = arith.constant 0 : index
    %0 = vector.load %arg1[%c0, %c0_0] : memref<16x128xf32, #tpu.memory_space<vmem>>, vector<16x128xf32>
    %1 = arith.truncf %0 : vector<16x128xf32> to vector<16x128xbf16>
    %c0_1 = arith.constant 0 : index
    %c0_2 = arith.constant 0 : index
    %2 = vector.load %arg2[%c0_1, %c0_2] : memref<128x128xbf16, #tpu.memory_space<vmem>>, vector<128x128xbf16>
    %cst = arith.constant dense<0.000000e+00> : vector<16x128xf32>
    %3 = tpu.matmul %1, %2, %cst {dimension_numbers = #tpu.dot_dimension_numbers<[1], [0], [0], [1], [0, 0, 1, 1], [], []>} : vector<16x128xbf16>, vector<128x128xbf16>, vector<16x128xf32> -> vector<16x128xf32>
    %c0_3 = arith.constant 0 : index
    %c0_4 = arith.constant 0 : index
    %4 = vector.load %arg3[%c0_3, %c0_4] : memref<1x128xf32, #tpu.memory_space<vmem>>, vector<1x128xf32>
    %5 = vector.broadcast %4 : vector<1x128xf32> to vector<16x128xf32>
    %6 = arith.addf %3, %5 : vector<16x128xf32>
    %cst_5 = arith.constant 0.000000e+00 : f32
    %7 = vector.broadcast %cst_5 : f32 to vector<16x128xf32>
    %8 = arith.maximumf %6, %7 : vector<16x128xf32>
    %9 = arith.addf %0, %8 : vector<16x128xf32>
    %10 = arith.truncf %9 : vector<16x128xf32> to vector<16x128xbf16>
    %c0_6 = arith.constant 0 : index
    %c0_7 = arith.constant 0 : index
    %11 = vector.load %arg4[%c0_6, %c0_7] : memref<128x128xbf16, #tpu.memory_space<vmem>>, vector<128x128xbf16>
    %cst_8 = arith.constant dense<0.000000e+00> : vector<16x128xf32>
    %12 = tpu.matmul %10, %11, %cst_8 {dimension_numbers = #tpu.dot_dimension_numbers<[1], [0], [0], [1], [0, 0, 1, 1], [], []>} : vector<16x128xbf16>, vector<128x128xbf16>, vector<16x128xf32> -> vector<16x128xf32>
    %c0_9 = arith.constant 0 : index
    %c0_10 = arith.constant 0 : index
    %13 = vector.load %arg5[%c0_9, %c0_10] : memref<1x128xf32, #tpu.memory_space<vmem>>, vector<1x128xf32>
    %14 = vector.broadcast %13 : vector<1x128xf32> to vector<16x128xf32>
    %15 = arith.addf %12, %14 : vector<16x128xf32>
    %cst_11 = arith.constant 0.000000e+00 : f32
    %16 = vector.broadcast %cst_11 : f32 to vector<16x128xf32>
    %17 = arith.maximumf %15, %16 : vector<16x128xf32>
    %18 = arith.addf %9, %17 : vector<16x128xf32>
    %19 = arith.truncf %18 : vector<16x128xf32> to vector<16x128xbf16>
    %c0_12 = arith.constant 0 : index
    %c0_13 = arith.constant 0 : index
    %20 = vector.load %arg6[%c0_12, %c0_13] : memref<128x128xbf16, #tpu.memory_space<vmem>>, vector<128x128xbf16>
    %cst_14 = arith.constant dense<0.000000e+00> : vector<16x128xf32>
    %21 = tpu.matmul %19, %20, %cst_14 {dimension_numbers = #tpu.dot_dimension_numbers<[1], [0], [0], [1], [0, 0, 1, 1], [], []>} : vector<16x128xbf16>, vector<128x128xbf16>, vector<16x128xf32> -> vector<16x128xf32>
    %c0_15 = arith.constant 0 : index
    %c0_16 = arith.constant 0 : index
    %22 = vector.load %arg7[%c0_15, %c0_16] : memref<1x128xf32, #tpu.memory_space<vmem>>, vector<1x128xf32>
    %23 = vector.broadcast %22 : vector<1x128xf32> to vector<16x128xf32>
    %24 = arith.addf %21, %23 : vector<16x128xf32>
    %cst_17 = arith.constant 0.000000e+00 : f32
    %25 = vector.broadcast %cst_17 : f32 to vector<16x128xf32>
    %26 = arith.maximumf %24, %25 : vector<16x128xf32>
    %27 = arith.addf %18, %26 : vector<16x128xf32>
    %28 = arith.truncf %27 : vector<16x128xf32> to vector<16x128xbf16>
    %c0_18 = arith.constant 0 : index
    %c0_19 = arith.constant 0 : index
    %29 = vector.load %arg8[%c0_18, %c0_19] : memref<128x128xbf16, #tpu.memory_space<vmem>>, vector<128x128xbf16>
    %cst_20 = arith.constant dense<0.000000e+00> : vector<16x128xf32>
    %30 = tpu.matmul %28, %29, %cst_20 {dimension_numbers = #tpu.dot_dimension_numbers<[1], [0], [0], [1], [0, 0, 1, 1], [], []>} : vector<16x128xbf16>, vector<128x128xbf16>, vector<16x128xf32> -> vector<16x128xf32>
    %c0_21 = arith.constant 0 : index
    %c0_22 = arith.constant 0 : index
    %31 = vector.load %arg9[%c0_21, %c0_22] : memref<1x128xf32, #tpu.memory_space<vmem>>, vector<1x128xf32>
    %32 = vector.broadcast %31 : vector<1x128xf32> to vector<16x128xf32>
    %33 = arith.addf %30, %32 : vector<16x128xf32>
    %cst_23 = arith.constant 0.000000e+00 : f32
    %34 = vector.broadcast %cst_23 : f32 to vector<16x128xf32>
    %35 = arith.maximumf %33, %34 : vector<16x128xf32>
    %36 = arith.addf %27, %35 : vector<16x128xf32>
    %c0_24 = arith.constant 0 : index
    %c0_25 = arith.constant 0 : index
    %37 = vector.load %arg10[%c0_24, %c0_25] : memref<16x128xf32, #tpu.memory_space<vmem>>, vector<16x128xf32>
    tpu.vector_store %arg10[%c0_24, %c0_25], %36 {strides = array<i32>} : memref<16x128xf32, #tpu.memory_space<vmem>>, vector<16x128xf32>,
    return
  }
  func.func @transform_0(%arg0: i32) -> (i32, i32) {
    %c0_i32 = arith.constant 0 : i32
    %c0_i32_0 = arith.constant 0 : i32
    return %arg0, %c0_i32 : i32, i32
  }
  func.func @transform_1(%arg0: i32) -> (i32, i32) {
    %c0_i32 = arith.constant 0 : i32
    %c0_i32_0 = arith.constant 0 : i32
    %c0_i32_1 = arith.constant 0 : i32
    return %c0_i32, %c0_i32_0 : i32, i32
  }
  func.func @transform_2(%arg0: i32) -> (i32, i32) {
    %c0_i32 = arith.constant 0 : i32
    %c0_i32_0 = arith.constant 0 : i32
    %c0_i32_1 = arith.constant 0 : i32
    return %c0_i32, %c0_i32_0 : i32, i32
  }
  func.func @transform_3(%arg0: i32) -> (i32, i32) {
    %c0_i32 = arith.constant 0 : i32
    %c0_i32_0 = arith.constant 0 : i32
    %c0_i32_1 = arith.constant 0 : i32
    return %c0_i32, %c0_i32_0 : i32, i32
  }
  func.func @transform_4(%arg0: i32) -> (i32, i32) {
    %c0_i32 = arith.constant 0 : i32
    %c0_i32_0 = arith.constant 0 : i32
    %c0_i32_1 = arith.constant 0 : i32
    return %c0_i32, %c0_i32_0 : i32, i32
  }
  func.func @transform_5(%arg0: i32) -> (i32, i32) {
    %c0_i32 = arith.constant 0 : i32
    %c0_i32_0 = arith.constant 0 : i32
    %c0_i32_1 = arith.constant 0 : i32
    return %c0_i32, %c0_i32_0 : i32, i32
  }
  func.func @transform_6(%arg0: i32) -> (i32, i32) {
    %c0_i32 = arith.constant 0 : i32
    %c0_i32_0 = arith.constant 0 : i32
    %c0_i32_1 = arith.constant 0 : i32
    return %c0_i32, %c0_i32_0 : i32, i32
  }
  func.func @transform_7(%arg0: i32) -> (i32, i32) {
    %c0_i32 = arith.constant 0 : i32
    %c0_i32_0 = arith.constant 0 : i32
    %c0_i32_1 = arith.constant 0 : i32
    return %c0_i32, %c0_i32_0 : i32, i32
  }
  func.func @transform_8(%arg0: i32) -> (i32, i32) {
    %c0_i32 = arith.constant 0 : i32
    %c0_i32_0 = arith.constant 0 : i32
    %c0_i32_1 = arith.constant 0 : i32
    return %c0_i32, %c0_i32_0 : i32, i32
  }
  func.func @transform_9(%arg0: i32) -> (i32, i32) {
    %c0_i32 = arith.constant 0 : i32
    %c0_i32_0 = arith.constant 0 : i32
    return %arg0, %c0_i32 : i32, i32
  }
}

module attributes {stable_mosaic.version = 11 : i64} {
  func.func @_resnet_kernel(%arg0: i32, %arg1: memref<16x128xf32, #tpu.memory_space<vmem>>, %arg2: memref<128x128xbf16, #tpu.memory_space<vmem>>, %arg3: memref<1x128xf32, #tpu.memory_space<vmem>>, %arg4: memref<128x128xbf16, #tpu.memory_space<vmem>>, %arg5: memref<1x128xf32, #tpu.memory_space<vmem>>, %arg6: memref<128x128xbf16, #tpu.memory_space<vmem>>, %arg7: memref<1x128xf32, #tpu.memory_space<vmem>>, %arg8: memref<128x128xbf16, #tpu.memory_space<vmem>>, %arg9: memref<1x128xf32, #tpu.memory_space<vmem>>, %arg10: memref<16x128xf32, #tpu.memory_space<vmem>>) attributes {dimension_semantics = [#tpu.dimension_semantics<parallel>], iteration_bounds = array<i64: 1>, scalar_prefetch = 0 : i64, scratch_operands = 0 : i64, tpu.core_type = #tpu.core_type<tc>, window_params = [{transform_indices = @transform_0, window_bounds = array<i64: 16, 128>}, {pipeline_mode = #tpu.pipeline_mode<synchronous>, transform_indices = @transform_1, window_bounds = array<i64: 128, 128>}, {pipeline_mode = #tpu.pipeline_mode<synchronous>, transform_indices = @transform_2, window_bounds = array<i64: 1, 128>}, {pipeline_mode = #tpu.pipeline_mode<synchronous>, transform_indices = @transform_3, window_bounds = array<i64: 128, 128>}, {pipeline_mode = #tpu.pipeline_mode<synchronous>, transform_indices = @transform_4, window_bounds = array<i64: 1, 128>}, {pipeline_mode = #tpu.pipeline_mode<synchronous>, transform_indices = @transform_5, window_bounds = array<i64: 128, 128>}, {pipeline_mode = #tpu.pipeline_mode<synchronous>, transform_indices = @transform_6, window_bounds = array<i64: 1, 128>}, {pipeline_mode = #tpu.pipeline_mode<synchronous>, transform_indices = @transform_7, window_bounds = array<i64: 128, 128>}, {pipeline_mode = #tpu.pipeline_mode<synchronous>, transform_indices = @transform_8, window_bounds = array<i64: 1, 128>}, {transform_indices = @transform_9, window_bounds = array<i64: 16, 128>}]} {
    %c0 = arith.constant 0 : index
    %c0_0 = arith.constant 0 : index
    %0 = vector.load %arg1[%c0, %c0_0] : memref<16x128xf32, #tpu.memory_space<vmem>>, vector<16x128xf32>
    %1 = arith.truncf %0 : vector<16x128xf32> to vector<16x128xbf16>
    %c0_1 = arith.constant 0 : index
    %c0_2 = arith.constant 0 : index
    %2 = vector.load %arg2[%c0_1, %c0_2] : memref<128x128xbf16, #tpu.memory_space<vmem>>, vector<128x128xbf16>
    %cst = arith.constant dense<0.000000e+00> : vector<16x128xf32>
    %3 = tpu.matmul %1, %2, %cst {dimension_numbers = #tpu.dot_dimension_numbers<[1], [0], [0], [1], [0, 0, 1, 1], [], []>} : vector<16x128xbf16>, vector<128x128xbf16>, vector<16x128xf32> -> vector<16x128xf32>
    %c0_3 = arith.constant 0 : index
    %c0_4 = arith.constant 0 : index
    %4 = vector.load %arg3[%c0_3, %c0_4] : memref<1x128xf32, #tpu.memory_space<vmem>>, vector<1x128xf32>
    %5 = vector.broadcast %4 : vector<1x128xf32> to vector<16x128xf32>
    %6 = arith.addf %3, %5 : vector<16x128xf32>
    %cst_5 = arith.constant 0.000000e+00 : f32
    %7 = vector.broadcast %cst_5 : f32 to vector<16x128xf32>
    %8 = arith.maximumf %6, %7 : vector<16x128xf32>
    %9 = arith.addf %0, %8 : vector<16x128xf32>
    %10 = arith.truncf %9 : vector<16x128xf32> to vector<16x128xbf16>
    %c0_6 = arith.constant 0 : index
    %c0_7 = arith.constant 0 : index
    %11 = vector.load %arg4[%c0_6, %c0_7] : memref<128x128xbf16, #tpu.memory_space<vmem>>, vector<128x128xbf16>
    %cst_8 = arith.constant dense<0.000000e+00> : vector<16x128xf32>
    %12 = tpu.matmul %10, %11, %cst_8 {dimension_numbers = #tpu.dot_dimension_numbers<[1], [0], [0], [1], [0, 0, 1, 1], [], []>} : vector<16x128xbf16>, vector<128x128xbf16>, vector<16x128xf32> -> vector<16x128xf32>
    %c0_9 = arith.constant 0 : index
    %c0_10 = arith.constant 0 : index
    %13 = vector.load %arg5[%c0_9, %c0_10] : memref<1x128xf32, #tpu.memory_space<vmem>>, vector<1x128xf32>
    %14 = vector.broadcast %13 : vector<1x128xf32> to vector<16x128xf32>
    %15 = arith.addf %12, %14 : vector<16x128xf32>
    %cst_11 = arith.constant 0.000000e+00 : f32
    %16 = vector.broadcast %cst_11 : f32 to vector<16x128xf32>
    %17 = arith.maximumf %15, %16 : vector<16x128xf32>
    %18 = arith.addf %9, %17 : vector<16x128xf32>
    %19 = arith.truncf %18 : vector<16x128xf32> to vector<16x128xbf16>
    %c0_12 = arith.constant 0 : index
    %c0_13 = arith.constant 0 : index
    %20 = vector.load %arg6[%c0_12, %c0_13] : memref<128x128xbf16, #tpu.memory_space<vmem>>, vector<128x128xbf16>
    %cst_14 = arith.constant dense<0.000000e+00> : vector<16x128xf32>
    %21 = tpu.matmul %19, %20, %cst_14 {dimension_numbers = #tpu.dot_dimension_numbers<[1], [0], [0], [1], [0, 0, 1, 1], [], []>} : vector<16x128xbf16>, vector<128x128xbf16>, vector<16x128xf32> -> vector<16x128xf32>
    %c0_15 = arith.constant 0 : index
    %c0_16 = arith.constant 0 : index
    %22 = vector.load %arg7[%c0_15, %c0_16] : memref<1x128xf32, #tpu.memory_space<vmem>>, vector<1x128xf32>
    %23 = vector.broadcast %22 : vector<1x128xf32> to vector<16x128xf32>
    %24 = arith.addf %21, %23 : vector<16x128xf32>
    %cst_17 = arith.constant 0.000000e+00 : f32
    %25 = vector.broadcast %cst_17 : f32 to vector<16x128xf32>
    %26 = arith.maximumf %24, %25 : vector<16x128xf32>
    %27 = arith.addf %18, %26 : vector<16x128xf32>
    %28 = arith.truncf %27 : vector<16x128xf32> to vector<16x128xbf16>
    %c0_18 = arith.constant 0 : index
    %c0_19 = arith.constant 0 : index
    %29 = vector.load %arg8[%c0_18, %c0_19] : memref<128x128xbf16, #tpu.memory_space<vmem>>, vector<128x128xbf16>
    %cst_20 = arith.constant dense<0.000000e+00> : vector<16x128xf32>
    %30 = tpu.matmul %28, %29, %cst_20 {dimension_numbers = #tpu.dot_dimension_numbers<[1], [0], [0], [1], [0, 0, 1, 1], [], []>} : vector<16x128xbf16>, vector<128x128xbf16>, vector<16x128xf32> -> vector<16x128xf32>
    %c0_21 = arith.constant 0 : index
    %c0_22 = arith.constant 0 : index
    %31 = vector.load %arg9[%c0_21, %c0_22] : memref<1x128xf32, #tpu.memory_space<vmem>>, vector<1x128xf32>
    %32 = vector.broadcast %31 : vector<1x128xf32> to vector<16x128xf32>
    %33 = arith.addf %30, %32 : vector<16x128xf32>
    %cst_23 = arith.constant 0.000000e+00 : f32
    %34 = vector.broadcast %cst_23 : f32 to vector<16x128xf32>
    %35 = arith.maximumf %33, %34 : vector<16x128xf32>
    %36 = arith.addf %27, %35 : vector<16x128xf32>
    %c0_24 = arith.constant 0 : index
    %c0_25 = arith.constant 0 : index
    %37 = vector.load %arg10[%c0_24, %c0_25] : memref<16x128xf32, #tpu.memory_space<vmem>>, vector<16x128xf32>
    tpu.vector_store %arg10[%c0_24, %c0_25], %36 {strides = array<i32>} : memref<16x128xf32, #tpu.memory_space<vmem>>, vector<16x128xf32>,
    return
  }
  func.func @transform_0(%arg0: i32) -> (i32, i32) {
    %c0_i32 = arith.constant 0 : i32
    %c0_i32_0 = arith.constant 0 : i32
    return %arg0, %c0_i32 : i32, i32
  }
  func.func @transform_1(%arg0: i32) -> (i32, i32) {
    %c0_i32 = arith.constant 0 : i32
    %c0_i32_0 = arith.constant 0 : i32
    %c0_i32_1 = arith.constant 0 : i32
    return %c0_i32, %c0_i32_0 : i32, i32
  }
  func.func @transform_2(%arg0: i32) -> (i32, i32) {
    %c0_i32 = arith.constant 0 : i32
    %c0_i32_0 = arith.constant 0 : i32
    %c0_i32_1 = arith.constant 0 : i32
    return %c0_i32, %c0_i32_0 : i32, i32
  }
  func.func @transform_3(%arg0: i32) -> (i32, i32) {
    %c0_i32 = arith.constant 0 : i32
    %c0_i32_0 = arith.constant 0 : i32
    %c0_i32_1 = arith.constant 0 : i32
    return %c0_i32, %c0_i32_0 : i32, i32
  }
  func.func @transform_4(%arg0: i32) -> (i32, i32) {
    %c0_i32 = arith.constant 0 : i32
    %c0_i32_0 = arith.constant 0 : i32
    %c0_i32_1 = arith.constant 0 : i32
    return %c0_i32, %c0_i32_0 : i32, i32
  }
  func.func @transform_5(%arg0: i32) -> (i32, i32) {
    %c0_i32 = arith.constant 0 : i32
    %c0_i32_0 = arith.constant 0 : i32
    %c0_i32_1 = arith.constant 0 : i32
    return %c0_i32, %c0_i32_0 : i32, i32
  }
  func.func @transform_6(%arg0: i32) -> (i32, i32) {
    %c0_i32 = arith.constant 0 : i32
    %c0_i32_0 = arith.constant 0 : i32
    %c0_i32_1 = arith.constant 0 : i32
    return %c0_i32, %c0_i32_0 : i32, i32
  }
  func.func @transform_7(%arg0: i32) -> (i32, i32) {
    %c0_i32 = arith.constant 0 : i32
    %c0_i32_0 = arith.constant 0 : i32
    %c0_i32_1 = arith.constant 0 : i32
    return %c0_i32, %c0_i32_0 : i32, i32
  }
  func.func @transform_8(%arg0: i32) -> (i32, i32) {
    %c0_i32 = arith.constant 0 : i32
    %c0_i32_0 = arith.constant 0 : i32
    %c0_i32_1 = arith.constant 0 : i32
    return %c0_i32, %c0_i32_0 : i32, i32
  }
  func.func @transform_9(%arg0: i32) -> (i32, i32) {
    %c0_i32 = arith.constant 0 : i32
    %c0_i32_0 = arith.constant 0 : i32
    return %arg0, %c0_i32 : i32, i32
  }
}

</mosaic_0001>

<bundles_post_ra>
// kernel: tpu_custom_call.1
= control target key start
LH: loop header
LB: loop body
LE: loop exit
PB: predicated region body
PF: predicated region fallthrough
CT: control target
= control target key end

     0   :  { %14 = vsyncpa [#allocation3], 0  ;;  %s1133_s0 = inlined_call_operand.hbm [shape: f32[16,128], index: 0, kind: input, shape index: {}]   ;;  %s1134_s1 = inlined_call_operand.hbm [shape: bf16[128,128], index: 1, kind: input, shape index: {}]   ;;  %s1135_s2 = inlined_call_operand.vmem [shape: f32[1,128], index: 2, kind: input, shape index: {}]   ;;  %s1136_s3 = inlined_call_operand.hbm [shape: bf16[128,128], index: 3, kind: input, shape index: {}]   ;;  %s1137_s4 = inlined_call_operand.vmem [shape: f32[1,128], index: 4, kind: input, shape index: {}]   ;;  %s1138_s5 = inlined_call_operand.hbm [shape: bf16[128,128], index: 5, kind: input, shape index: {}]   ;;  %s1139_s6 = inlined_call_operand.vmem [shape: f32[1,128], index: 6, kind: input, shape index: {}]   ;;  %s1140_s7 = inlined_call_operand.hbm [shape: bf16[128,128], index: 7, kind: input, shape index: {}]   ;;  %s1141_s8 = inlined_call_operand.vmem [shape: f32[1,128], index: 8, kind: input, shape index: {}]   ;;  %s1142_s9 = inlined_call_operand.hbm [shape: f32[16,128], index: 9, kind: output, shape index: {}]  }
   0x1   :  { %15 = vsyncpa [#allocation6], 0 }
   0x2   :  { %16 = vsyncpa [#allocation9], 0 }
   0x3   :  { %17 = vsyncpa [#allocation4], 0  ;;  %s929_s30 = smov [#allocation5]   ;;  %s789_s13 = scalar_lea.hbm %s1134_s1, 1024 }
   0x4   :  { %s35_s10 = sshll.u32 %s929_s30, 4  ;;  %p790_p0 = scmp.ne.s32.totalorder %s1134_s1, %s789_s13  ;;  %s36_s10 = int_to_ptr.vmem [resolvable:$true] %s35_s10 }
   0x5   :  { %p793_p1 = scmp.lt.u32.totalorder %s789_s13, %s1134_s1 }
   0x7   :  { %p795_p2 = pnand %p793_p1, %p790_p0 }
   0x9   :  { %798 = shalt.err (!%p795_p2)
}
   0xa   :  { %s799_s18 = scalar_lea.vmem %s36_s10, 1024  ;;  %p804_p4 = scmp.lt.s32.totalorder %s36_s10, %s36_s10 }
   0xb   :  { %p800_p3 = scmp.ne.s32.totalorder %s36_s10, %s799_s18  ;;  %p805_p5 = scmp.lt.s32.totalorder %s799_s18, %s799_s18 }
   0xd   :  { %p806_p6 = por %p805_p5, %p804_p4 }
   0xf   :  { %p807_p7 = pnand %p806_p6, %p800_p3 }
  0x11   :  { %810 = shalt.err (!%p807_p7)
}
  0x12   :  { %s930_s19 = smov 64   ;;  %s931_s20 = smov 4  }
  0x13   :  { %41 = dma.hbm_to_vmem [thread:$0]  %s1134_s1, 1024, %s36_s10, [#allocation6], %s930_s19, %s930_s19, %s931_s20  }
  0x14   :  { %s932_s23 = smov [#allocation8]   ;;  %s933_s25 = smov [#allocation2]  }
  0x15   :  { %s63_s24 = sshll.u32 %s932_s23, 4  ;;  %s23_s26 = sshll.u32 %s933_s25, 4  ;;  %s64_s24 = int_to_ptr.vmem [resolvable:$true] %s63_s24  ;;  %s24_s26 = int_to_ptr.vmem [resolvable:$true] %s23_s26 }
  0x16   :  { %s811_s29 = scalar_lea.hbm %s1138_s5, 1024 }
  0x17   :  { %p812_p8 = scmp.ne.s32.totalorder %s1138_s5, %s811_s29  ;;  %p815_p9 = scmp.lt.u32.totalorder %s811_s29, %s1138_s5 }
  0x19   :  { %p817_p10 = pnand %p815_p9, %p812_p8 }
  0x1b   :  { %820 = shalt.err (!%p817_p10)
}
  0x1c   :  { %s821_s1 = scalar_lea.vmem %s64_s24, 1024  ;;  %p826_p12 = scmp.lt.s32.totalorder %s64_s24, %s64_s24 }
  0x1d   :  { %p822_p11 = scmp.ne.s32.totalorder %s64_s24, %s821_s1  ;;  %p827_p13 = scmp.lt.s32.totalorder %s821_s1, %s821_s1 }
  0x1f   :  { %p828_p0 = por %p827_p13, %p826_p12 }
  0x21   :  { %p829_p1 = pnand %p828_p0, %p822_p11 }
  0x23   :  { %832 = shalt.err (!%p829_p1)
}
  0x24   :  { %69 = dma.hbm_to_vmem [thread:$0]  %s1138_s5, 1024, %s64_s24, [#allocation9], %s930_s19, %s930_s19, %s931_s20  }
  0x25   :  { %s833_s17 = scalar_lea.hbm %s1133_s0, 256 }
  0x26   :  { %p834_p2 = scmp.ne.s32.totalorder %s1133_s0, %s833_s17  ;;  %p837_p3 = scmp.lt.u32.totalorder %s833_s17, %s1133_s0 }
  0x28   :  { %p839_p4 = pnand %p837_p3, %p834_p2 }
  0x2a   :  { %842 = shalt.err (!%p839_p4)
}
  0x2b   :  { %s843_s25 = scalar_lea.vmem %s24_s26, 256  ;;  %p848_p6 = scmp.lt.s32.totalorder %s24_s26, %s24_s26 }
  0x2c   :  { %p844_p5 = scmp.ne.s32.totalorder %s24_s26, %s843_s25  ;;  %p849_p7 = scmp.lt.s32.totalorder %s843_s25, %s843_s25 }
  0x2e   :  { %p850_p8 = por %p849_p7, %p848_p6 }
  0x30   :  { %p851_p9 = pnand %p850_p8, %p844_p5 }
  0x32   :  { %854 = shalt.err (!%p851_p9)
}
  0x33   :  { %s934_s5 = smov 128   ;;  %s935_s24 = smov 8  }
  0x34   :  { %29 = dma.hbm_to_vmem [thread:$0]  %s1133_s0, 256, %s24_s26, [#allocation3], %s934_s5, %s934_s5, %s935_s24  }
  0x35   :  { %s936_s29 = smov [#allocation7]   ;;  %s937_s11 = smov [#allocation10]  }
  0x36   :  { %s49_s30 = sshll.u32 %s936_s29, 4  ;;  %s77_s12 = sshll.u32 %s937_s11, 4  ;;  %s50_s30 = int_to_ptr.vmem [resolvable:$true] %s49_s30  ;;  %s78_s12 = int_to_ptr.vmem [resolvable:$true] %s77_s12 }
  0x37   :  { %s855_s10 = scalar_lea.hbm %s1136_s3, 1024 }
  0x38   :  { %p856_p10 = scmp.ne.s32.totalorder %s1136_s3, %s855_s10  ;;  %p859_p11 = scmp.lt.u32.totalorder %s855_s10, %s1136_s3 }
  0x3a   :  { %p861_p12 = pnand %p859_p11, %p856_p10 }
  0x3c   :  { %864 = shalt.err (!%p861_p12)
}
  0x3d   :  { %s865_s0 = scalar_lea.vmem %s50_s30, 1024  ;;  %p870_p0 = scmp.lt.s32.totalorder %s50_s30, %s50_s30 }
  0x3e   :  { %p866_p13 = scmp.ne.s32.totalorder %s50_s30, %s865_s0  ;;  %p871_p1 = scmp.lt.s32.totalorder %s865_s0, %s865_s0 }
  0x40   :  { %p872_p2 = por %p871_p1, %p870_p0 }
  0x42   :  { %p873_p3 = pnand %p872_p2, %p866_p13 }
  0x44   :  { %876 = shalt.err (!%p873_p3)
}
  0x45   :  { %55 = dma.hbm_to_vmem [thread:$0]  %s1136_s3, 1024, %s50_s30, [#allocation6], %s930_s19, %s930_s19, %s931_s20  }
  0x46   :  { %s877_s23 = scalar_lea.hbm %s1140_s7, 1024 }
  0x47   :  { %p878_p4 = scmp.ne.s32.totalorder %s1140_s7, %s877_s23  ;;  %p881_p5 = scmp.lt.u32.totalorder %s877_s23, %s1140_s7 }
  0x49   :  { %p883_p6 = pnand %p881_p5, %p878_p4 }
  0x4b   :  { %886 = shalt.err (!%p883_p6)
}
  0x4c   :  { %s887_s11 = scalar_lea.vmem %s78_s12, 1024  ;;  %p892_p8 = scmp.lt.s32.totalorder %s78_s12, %s78_s12 }
  0x4d   :  { %p888_p7 = scmp.ne.s32.totalorder %s78_s12, %s887_s11  ;;  %p893_p9 = scmp.lt.s32.totalorder %s887_s11, %s887_s11 }
  0x4f   :  { %p894_p10 = por %p893_p9, %p892_p8 }
  0x51   :  { %p895_p11 = pnand %p894_p10, %p888_p7 }
  0x53   :  { %898 = shalt.err (!%p895_p11)
}
  0x54   :  { %83 = dma.hbm_to_vmem [thread:$0]  %s1140_s7, 1024, %s78_s12, [#allocation9], %s930_s19, %s930_s19, %s931_s20  }
  0x55   :  { %921 = dma.done.wait [#allocation3], 256  }
  0x56   :  { %922 = vsyncadd [#allocation3], 4294967040 }
  0x57   :  { %923 = dma.done.wait [#allocation6], 2048  }
  0x58   :  { %924 = vsyncadd [#allocation6], 4294965248 }
  0x59   :  { %925 = dma.done.wait [#allocation9], 2048  }
  0x5a   :  { %926 = vsyncadd [#allocation9], 4294965248  ;;  %v938_v0 = vmov 0.0   ;;  %vm939_vm0 = vmmov 0   ;;  %v757_v1 = vld [vmem:[#allocation5] sm:$0xff]   ;;  %v758_v2 = vld [vmem:[#allocation5 + $0x8] sm:$0xff]  }
  0x5b   :  { %665 = vmatprep.subr.bf16.mxu0 %v938_v0  ;;  %681 = vmatprep.mubr.msk.bf16.mxu0 %vm939_vm0, %v938_v0  ;;  %v759_v3 = vld [vmem:[#allocation5 + $0x10] sm:$0xff]   ;;  %v765_v4 = vld [vmem:[#allocation7] sm:$0xff]   ;;  %v760_v5 = vld [vmem:[#allocation5 + $0x18] sm:$0xff]  }
  0x5c   :  { %685 = vmatprep.subr.bf16.mxu1 %v938_v0  ;;  %701 = vmatprep.mubr.msk.bf16.mxu1 %vm939_vm0, %v938_v0  ;;  %v766_v6 = vld [vmem:[#allocation7 + $0x8] sm:$0xff]   ;;  %v761_v7 = vld [vmem:[#allocation5 + $0x20] sm:$0xff]   ;;  %v767_v8 = vld [vmem:[#allocation7 + $0x10] sm:$0xff]  }
  0x5d   :  { %666 = vmatpush3.bf16.msra.mxu0 %v757_v1  ;;  %686 = vmatpush3.bf16.msra.mxu1 %v765_v4  ;;  %v762_v9 = vld [vmem:[#allocation5 + $0x28] sm:$0xff]   ;;  %v768_v10 = vld [vmem:[#allocation7 + $0x18] sm:$0xff]   ;;  %v763_v11 = vld [vmem:[#allocation5 + $0x30] sm:$0xff]  }
  0x5e   :  { %667 = vmatprep.subr.bf16.mxu0 %v938_v0  ;;  %687 = vmatprep.subr.bf16.mxu1 %v938_v0  ;;  %v769_v12 = vld [vmem:[#allocation7 + $0x20] sm:$0xff]   ;;  %v764_v13 = vld [vmem:[#allocation5 + $0x38] sm:$0xff]   ;;  %v102_v14 = vld [vmem:[#allocation2] sm:$0xff] }
  0x5f   :  { %v103_v15 = vld [vmem:[#allocation2 + $0x8] sm:$0xff]  ;;  %v770_v17 = vld [vmem:[#allocation7 + $0x28] sm:$0xff]   ;;  %v771_v18 = vld [vmem:[#allocation7 + $0x30] sm:$0xff]  }
  0x60   :  { %v104_v16 = vpack.c.bf16 %v103_v15, %v102_v14  ;;  %v772_v19 = vld [vmem:[#allocation7 + $0x38] sm:$0xff]   ;;  %v773_v20 = vld [vmem:[#allocation8] sm:$0xff]   ;;  %v774_v21 = vld [vmem:[#allocation8 + $0x8] sm:$0xff]  }
  0x61   :  { %668 = vmatpush3.bf16.msra.mxu0 %v758_v2  ;;  %688 = vmatpush3.bf16.msra.mxu1 %v766_v6  ;;  %v775_v22 = vld [vmem:[#allocation8 + $0x10] sm:$0xff]   ;;  %v776_v23 = vld [vmem:[#allocation8 + $0x18] sm:$0xff]   ;;  %v777_v24 = vld [vmem:[#allocation8 + $0x20] sm:$0xff]  }
  0x62   :  { %669 = vmatprep.subr.bf16.mxu0 %v938_v0  ;;  %689 = vmatprep.subr.bf16.mxu1 %v938_v0  ;;  %v593_v25 = vld [vmem:[%s1135_s2] ss:$0 sm:$0xff]  ;;  %v778_v37 = vld [vmem:[#allocation8 + $0x28] sm:$0xff]   ;;  %v780_v39 = vld [vmem:[#allocation8 + $0x38] sm:$0xff]  }
  0x63   :  { %v779_v38 = vld [vmem:[#allocation8 + $0x30] sm:$0xff]   ;;  %v781_v40 = vld [vmem:[#allocation10] sm:$0xff]   ;;  %v782_v41 = vld [vmem:[#allocation10 + $0x8] sm:$0xff]  }
  0x64   :  { %v783_v42 = vld [vmem:[#allocation10 + $0x10] sm:$0xff]   ;;  %v784_v43 = vld [vmem:[#allocation10 + $0x18] sm:$0xff]   ;;  %v785_v44 = vld [vmem:[#allocation10 + $0x20] sm:$0xff]  }
  0x65   :  { %670 = vmatpush3.bf16.msra.mxu0 %v759_v3  ;;  %690 = vmatpush3.bf16.msra.mxu1 %v767_v8  ;;  %v602_v45 = vld [vmem:[%s1137_s4] ss:$0 sm:$0xff]  ;;  %v786_v57 = vld [vmem:[#allocation10 + $0x28] sm:$0xff]   ;;  %v788_v59 = vld [vmem:[#allocation10 + $0x38] sm:$0xff]  }
  0x66   :  { %671 = vmatprep.subr.bf16.mxu0 %v938_v0  ;;  %691 = vmatprep.subr.bf16.mxu1 %v938_v0  ;;  %v787_v58 = vld [vmem:[#allocation10 + $0x30] sm:$0xff]  }
  0x67   :  { %v611_v60 = vld [vmem:[%s1139_s6] ss:$0 sm:$0xff]  ;;  %s940_s6 = smov [#allocation11]  }
  0x68   :  { %s579_s10 = sshll.u32 %s940_s6, 4  ;;  %s580_s10 = int_to_ptr.vmem [resolvable:$true] %s579_s10 }
  0x69   :  { %672 = vmatpush3.bf16.msra.mxu0 %v760_v5  ;;  %692 = vmatpush3.bf16.msra.mxu1 %v768_v10  ;;  %s899_s14 = scalar_lea.vmem %s580_s10, 256  ;;  %p904_p13 = scmp.lt.s32.totalorder %s580_s10, %s580_s10 }
  0x6a   :  { %673 = vmatprep.subr.bf16.mxu0 %v938_v0  ;;  %693 = vmatprep.subr.bf16.mxu1 %v938_v0  ;;  %p900_p12 = scmp.ne.s32.totalorder %s580_s10, %s899_s14  ;;  %p905_p0 = scmp.lt.s32.totalorder %s899_s14, %s899_s14 }
  0x6c   :  { %p906_p1 = por %p905_p0, %p904_p13 }
  0x6d   :  { %674 = vmatpush3.bf16.msra.mxu0 %v761_v7  ;;  %694 = vmatpush3.bf16.msra.mxu1 %v769_v12 }
  0x6e   :  { %675 = vmatprep.subr.bf16.mxu0 %v938_v0  ;;  %695 = vmatprep.subr.bf16.mxu1 %v938_v0  ;;  %p907_p2 = pnand %p906_p1, %p900_p12 }
  0x71   :  { %676 = vmatpush3.bf16.msra.mxu0 %v762_v9  ;;  %696 = vmatpush3.bf16.msra.mxu1 %v770_v17 }
  0x72   :  { %677 = vmatprep.subr.bf16.mxu0 %v938_v0  ;;  %697 = vmatprep.subr.bf16.mxu1 %v938_v0 }
  0x75   :  { %678 = vmatpush3.bf16.msra.mxu0 %v763_v11  ;;  %698 = vmatpush3.bf16.msra.mxu1 %v771_v18 }
  0x76   :  { %679 = vmatprep.subr.bf16.mxu0 %v938_v0  ;;  %699 = vmatprep.subr.bf16.mxu1 %v938_v0 }
  0x79   :  { %680 = vmatpush3.bf16.msra.mxu0 %v764_v13  ;;  %700 = vmatpush3.bf16.msra.mxu1 %v772_v19 }
  0x7a   :  { %705 = vmatprep.subr.bf16.mxu0 %v938_v0  ;;  %725 = vmatprep.subr.bf16.mxu1 %v938_v0 }
  0x7c   :  { %682 = vmatmul.mubr.bf16.vlgmr.msra.gmra.mrb[0].mxu0 %v104_v16 }
  0x7d   :  { %721 = vmatprep.mubr.msk.bf16.mxu0 %vm939_vm0, %v938_v0  ;;  %706 = vmatpush3.bf16.msra.mxu0 %v773_v20 }
  0x7e   :  { %707 = vmatprep.subr.bf16.mxu0 %v938_v0 }
  0x81   :  { %708 = vmatpush3.bf16.msra.mxu0 %v774_v21 }
  0x82   :  { %709 = vmatprep.subr.bf16.mxu0 %v938_v0 }
  0x85   :  { %710 = vmatpush3.bf16.msra.mxu0 %v775_v22 }
  0x86   :  { %711 = vmatprep.subr.bf16.mxu0 %v938_v0 }
  0x89   :  { %712 = vmatpush3.bf16.msra.mxu0 %v776_v23 }
  0x8a   :  { %713 = vmatprep.subr.bf16.mxu0 %v938_v0 }
  0x8d   :  { %714 = vmatpush3.bf16.msra.mxu0 %v777_v24 }
  0x8e   :  { %715 = vmatprep.subr.bf16.mxu0 %v938_v0 }
  0x91   :  { %716 = vmatpush3.bf16.msra.mxu0 %v778_v37 }
  0x92   :  { %717 = vmatprep.subr.bf16.mxu0 %v938_v0 }
  0x95   :  { %718 = vmatpush3.bf16.msra.mxu0 %v779_v38 }
  0x96   :  { %719 = vmatprep.subr.bf16.mxu0 %v938_v0 }
  0x99   :  { %720 = vmatpush3.bf16.msra.mxu0 %v780_v39 }
 0x14f   :  { %v210_v26 = vpop.f32.mrb[0].mxu0 }
 0x150   :  { %v211_v27 = vadd.f32 %v593_v25, %v210_v26  ;;  %v683_v28 = vpop.f32.mrb[1].mxu0 }
 0x151   :  { %v213_v29 = vpop.f32.mrb[2].mxu0 }
 0x152   :  { %v217_v30 = vmax.f32 %v211_v27, 0.0  ;;  %v214_v31 = vadd.f32 %v593_v25, %v213_v29  ;;  %v684_v32 = vpop.f32.mrb[3].mxu0 }
 0x154   :  { %v218_v33 = vmax.f32 %v214_v31, 0.0  ;;  %v219_v34 = vadd.f32 %v217_v30, %v102_v14 }
 0x156   :  { %v220_v35 = vadd.f32 %v218_v33, %v103_v15 }
 0x158   :  { %v221_v36 = vpack.c.bf16 %v220_v35, %v219_v34 }
 0x15a   :  { %702 = vmatmul.mubr.bf16.vlgmr.msra.gmra.mrb[0].mxu1 %v221_v36 }
 0x15b   :  { %741 = vmatprep.mubr.msk.bf16.mxu1 %vm939_vm0, %v938_v0  ;;  %726 = vmatpush3.bf16.msra.mxu1 %v781_v40 }
 0x15c   :  { %727 = vmatprep.subr.bf16.mxu1 %v938_v0 }
 0x15f   :  { %728 = vmatpush3.bf16.msra.mxu1 %v782_v41 }
 0x160   :  { %729 = vmatprep.subr.bf16.mxu1 %v938_v0 }
 0x163   :  { %730 = vmatpush3.bf16.msra.mxu1 %v783_v42 }
 0x164   :  { %731 = vmatprep.subr.bf16.mxu1 %v938_v0 }
 0x167   :  { %732 = vmatpush3.bf16.msra.mxu1 %v784_v43 }
 0x168   :  { %733 = vmatprep.subr.bf16.mxu1 %v938_v0 }
 0x16b   :  { %734 = vmatpush3.bf16.msra.mxu1 %v785_v44 }
 0x16c   :  { %735 = vmatprep.subr.bf16.mxu1 %v938_v0 }
 0x16f   :  { %736 = vmatpush3.bf16.msra.mxu1 %v786_v57 }
 0x170   :  { %737 = vmatprep.subr.bf16.mxu1 %v938_v0 }
 0x173   :  { %738 = vmatpush3.bf16.msra.mxu1 %v787_v58 }
 0x174   :  { %739 = vmatprep.subr.bf16.mxu1 %v938_v0  ;;  %v620_v0 = vld [vmem:[%s1141_s8] ss:$0 sm:$0xff] }
 0x177   :  { %740 = vmatpush3.bf16.msra.mxu1 %v788_v59 }
 0x22d   :  { %v327_v46 = vpop.f32.mrb[0].mxu1 }
 0x22e   :  { %v328_v47 = vadd.f32 %v602_v45, %v327_v46  ;;  %v703_v48 = vpop.f32.mrb[1].mxu1 }
 0x22f   :  { %v330_v49 = vpop.f32.mrb[2].mxu1 }
 0x230   :  { %v334_v50 = vmax.f32 %v328_v47, 0.0  ;;  %v331_v51 = vadd.f32 %v602_v45, %v330_v49  ;;  %v704_v52 = vpop.f32.mrb[3].mxu1 }
 0x232   :  { %v335_v53 = vmax.f32 %v331_v51, 0.0  ;;  %v336_v54 = vadd.f32 %v334_v50, %v219_v34 }
 0x234   :  { %v337_v55 = vadd.f32 %v335_v53, %v220_v35 }
 0x236   :  { %v338_v56 = vpack.c.bf16 %v337_v55, %v336_v54 }
 0x238   :  { %722 = vmatmul.mubr.bf16.vlgmr.msra.gmra.mrb[4].mxu0 %v338_v56 }
 0x30b   :  { %v444_v61 = vpop.f32.mrb[4].mxu0 }
 0x30c   :  { %v445_v62 = vadd.f32 %v611_v60, %v444_v61  ;;  %v723_v63 = vpop.f32.mrb[5].mxu0 }
 0x30d   :  { %v447_v1 = vpop.f32.mrb[6].mxu0 }
 0x30e   :  { %v451_v2 = vmax.f32 %v445_v62, 0.0  ;;  %v448_v3 = vadd.f32 %v611_v60, %v447_v1  ;;  %v724_v4 = vpop.f32.mrb[7].mxu0 }
 0x310   :  { %v452_v5 = vmax.f32 %v448_v3, 0.0  ;;  %v453_v6 = vadd.f32 %v451_v2, %v336_v54 }
 0x312   :  { %v454_v7 = vadd.f32 %v452_v5, %v337_v55 }
 0x314   :  { %v455_v8 = vpack.c.bf16 %v454_v7, %v453_v6 }
 0x316   :  { %742 = vmatmul.mubr.bf16.vlgmr.msra.gmra.mrb[4].mxu1 %v455_v8 }
 0x3e9   :  { %v561_v9 = vpop.f32.mrb[4].mxu1 }
 0x3ea   :  { %v562_v10 = vadd.f32 %v620_v0, %v561_v9  ;;  %v743_v11 = vpop.f32.mrb[5].mxu1 }
 0x3eb   :  { %v564_v12 = vpop.f32.mrb[6].mxu1 }
 0x3ec   :  { %v568_v13 = vmax.f32 %v562_v10, 0.0  ;;  %v565_v14 = vadd.f32 %v620_v0, %v564_v12  ;;  %v744_v15 = vpop.f32.mrb[7].mxu1 }
 0x3ee   :  { %v570_v16 = vadd.f32 %v568_v13, %v453_v6  ;;  %v569_v17 = vmax.f32 %v565_v14, 0.0 }
 0x3f0   :  { %572 = vst [vmem:[#allocation11] sm:$0xff] %v570_v16  ;;  %v571_v18 = vadd.f32 %v569_v17, %v454_v7 }
 0x3f2   :  { %573 = vst [vmem:[#allocation11 + $0x8] sm:$0xff] %v571_v18 }
 0x3f3   :  { %910 = shalt.err (!%p907_p2)
}
 0x3f4   :  { %s911_s16 = scalar_lea.hbm %s1142_s9, 256 }
 0x3f5   :  { %p912_p3 = scmp.ne.s32.totalorder %s1142_s9, %s911_s16  ;;  %p915_p4 = scmp.lt.u32.totalorder %s911_s16, %s1142_s9 }
 0x3f7   :  { %p917_p5 = pnand %p915_p4, %p912_p3 }
 0x3f9   :  { %920 = shalt.err (!%p917_p5)
}
 0x3fa   :  { %585 = dma.vmem_to_hbm [thread:$0]  %s580_s10, 256, %s1142_s9, [#allocation4], %s934_s5, %s934_s5, %s935_s24  }
 0x3fb   :  { %927 = dma.done.wait [#allocation4], 256  }
 0x3fc   :  { %928 = vsyncadd [#allocation4], 4294967040 }
 0x3fd   :  { %589 = vsyncpa [#allocation3], 1 }
 0x3fe   :  { %590 = vsyncpa [#allocation6], 1 }
 0x3ff   :  { %591 = vsyncpa [#allocation9], 1 }
 0x400   :  { %592 = vsyncpa [#allocation4], 1 }

// kernel: tpu_custom_call.1
= control target key start
LH: loop header
LB: loop body
LE: loop exit
PB: predicated region body
PF: predicated region fallthrough
CT: control target
= control target key end

     0   :  { %14 = vsyncpa [#allocation3], 0  ;;  %s1133_s0 = inlined_call_operand.hbm [shape: f32[16,128], index: 0, kind: input, shape index: {}]   ;;  %s1134_s1 = inlined_call_operand.hbm [shape: bf16[128,128], index: 1, kind: input, shape index: {}]   ;;  %s1135_s2 = inlined_call_operand.vmem [shape: f32[1,128], index: 2, kind: input, shape index: {}]   ;;  %s1136_s3 = inlined_call_operand.hbm [shape: bf16[128,128], index: 3, kind: input, shape index: {}]   ;;  %s1137_s4 = inlined_call_operand.vmem [shape: f32[1,128], index: 4, kind: input, shape index: {}]   ;;  %s1138_s5 = inlined_call_operand.hbm [shape: bf16[128,128], index: 5, kind: input, shape index: {}]   ;;  %s1139_s6 = inlined_call_operand.vmem [shape: f32[1,128], index: 6, kind: input, shape index: {}]   ;;  %s1140_s7 = inlined_call_operand.hbm [shape: bf16[128,128], index: 7, kind: input, shape index: {}]   ;;  %s1141_s8 = inlined_call_operand.vmem [shape: f32[1,128], index: 8, kind: input, shape index: {}]   ;;  %s1142_s9 = inlined_call_operand.hbm [shape: f32[16,128], index: 9, kind: output, shape index: {}]  }
   0x1   :  { %15 = vsyncpa [#allocation6], 0 }
   0x2   :  { %16 = vsyncpa [#allocation9], 0 }
   0x3   :  { %17 = vsyncpa [#allocation4], 0  ;;  %s929_s30 = smov [#allocation5]   ;;  %s789_s13 = scalar_lea.hbm %s1134_s1, 1024 }
   0x4   :  { %s35_s10 = sshll.u32 %s929_s30, 4  ;;  %p790_p0 = scmp.ne.s32.totalorder %s1134_s1, %s789_s13  ;;  %s36_s10 = int_to_ptr.vmem [resolvable:$true] %s35_s10 }
   0x5   :  { %p793_p1 = scmp.lt.u32.totalorder %s789_s13, %s1134_s1 }
   0x7   :  { %p795_p2 = pnand %p793_p1, %p790_p0 }
   0x9   :  { %798 = shalt.err (!%p795_p2)
}
   0xa   :  { %s799_s18 = scalar_lea.vmem %s36_s10, 1024  ;;  %p804_p4 = scmp.lt.s32.totalorder %s36_s10, %s36_s10 }
   0xb   :  { %p800_p3 = scmp.ne.s32.totalorder %s36_s10, %s799_s18  ;;  %p805_p5 = scmp.lt.s32.totalorder %s799_s18, %s799_s18 }
   0xd   :  { %p806_p6 = por %p805_p5, %p804_p4 }
   0xf   :  { %p807_p7 = pnand %p806_p6, %p800_p3 }
  0x11   :  { %810 = shalt.err (!%p807_p7)
}
  0x12   :  { %s930_s19 = smov 64   ;;  %s931_s20 = smov 4  }
  0x13   :  { %41 = dma.hbm_to_vmem [thread:$0]  %s1134_s1, 1024, %s36_s10, [#allocation6], %s930_s19, %s930_s19, %s931_s20  }
  0x14   :  { %s932_s23 = smov [#allocation8]   ;;  %s933_s25 = smov [#allocation2]  }
  0x15   :  { %s63_s24 = sshll.u32 %s932_s23, 4  ;;  %s23_s26 = sshll.u32 %s933_s25, 4  ;;  %s64_s24 = int_to_ptr.vmem [resolvable:$true] %s63_s24  ;;  %s24_s26 = int_to_ptr.vmem [resolvable:$true] %s23_s26 }
  0x16   :  { %s811_s29 = scalar_lea.hbm %s1138_s5, 1024 }
  0x17   :  { %p812_p8 = scmp.ne.s32.totalorder %s1138_s5, %s811_s29  ;;  %p815_p9 = scmp.lt.u32.totalorder %s811_s29, %s1138_s5 }
  0x19   :  { %p817_p10 = pnand %p815_p9, %p812_p8 }
  0x1b   :  { %820 = shalt.err (!%p817_p10)
}
  0x1c   :  { %s821_s1 = scalar_lea.vmem %s64_s24, 1024  ;;  %p826_p12 = scmp.lt.s32.totalorder %s64_s24, %s64_s24 }
  0x1d   :  { %p822_p11 = scmp.ne.s32.totalorder %s64_s24, %s821_s1  ;;  %p827_p13 = scmp.lt.s32.totalorder %s821_s1, %s821_s1 }
  0x1f   :  { %p828_p0 = por %p827_p13, %p826_p12 }
  0x21   :  { %p829_p1 = pnand %p828_p0, %p822_p11 }
  0x23   :  { %832 = shalt.err (!%p829_p1)
}
  0x24   :  { %69 = dma.hbm_to_vmem [thread:$0]  %s1138_s5, 1024, %s64_s24, [#allocation9], %s930_s19, %s930_s19, %s931_s20  }
  0x25   :  { %s833_s17 = scalar_lea.hbm %s1133_s0, 256 }
  0x26   :  { %p834_p2 = scmp.ne.s32.totalorder %s1133_s0, %s833_s17  ;;  %p837_p3 = scmp.lt.u32.totalorder %s833_s17, %s1133_s0 }
  0x28   :  { %p839_p4 = pnand %p837_p3, %p834_p2 }
  0x2a   :  { %842 = shalt.err (!%p839_p4)
}
  0x2b   :  { %s843_s25 = scalar_lea.vmem %s24_s26, 256  ;;  %p848_p6 = scmp.lt.s32.totalorder %s24_s26, %s24_s26 }
  0x2c   :  { %p844_p5 = scmp.ne.s32.totalorder %s24_s26, %s843_s25  ;;  %p849_p7 = scmp.lt.s32.totalorder %s843_s25, %s843_s25 }
  0x2e   :  { %p850_p8 = por %p849_p7, %p848_p6 }
  0x30   :  { %p851_p9 = pnand %p850_p8, %p844_p5 }
  0x32   :  { %854 = shalt.err (!%p851_p9)
}
  0x33   :  { %s934_s5 = smov 128   ;;  %s935_s24 = smov 8  }
  0x34   :  { %29 = dma.hbm_to_vmem [thread:$0]  %s1133_s0, 256, %s24_s26, [#allocation3], %s934_s5, %s934_s5, %s935_s24  }
  0x35   :  { %s936_s29 = smov [#allocation7]   ;;  %s937_s11 = smov [#allocation10]  }
  0x36   :  { %s49_s30 = sshll.u32 %s936_s29, 4  ;;  %s77_s12 = sshll.u32 %s937_s11, 4  ;;  %s50_s30 = int_to_ptr.vmem [resolvable:$true] %s49_s30  ;;  %s78_s12 = int_to_ptr.vmem [resolvable:$true] %s77_s12 }
  0x37   :  { %s855_s10 = scalar_lea.hbm %s1136_s3, 1024 }
  0x38   :  { %p856_p10 = scmp.ne.s32.totalorder %s1136_s3, %s855_s10  ;;  %p859_p11 = scmp.lt.u32.totalorder %s855_s10, %s1136_s3 }
  0x3a   :  { %p861_p12 = pnand %p859_p11, %p856_p10 }
  0x3c   :  { %864 = shalt.err (!%p861_p12)
}
  0x3d   :  { %s865_s0 = scalar_lea.vmem %s50_s30, 1024  ;;  %p870_p0 = scmp.lt.s32.totalorder %s50_s30, %s50_s30 }
  0x3e   :  { %p866_p13 = scmp.ne.s32.totalorder %s50_s30, %s865_s0  ;;  %p871_p1 = scmp.lt.s32.totalorder %s865_s0, %s865_s0 }
  0x40   :  { %p872_p2 = por %p871_p1, %p870_p0 }
  0x42   :  { %p873_p3 = pnand %p872_p2, %p866_p13 }
  0x44   :  { %876 = shalt.err (!%p873_p3)
}
  0x45   :  { %55 = dma.hbm_to_vmem [thread:$0]  %s1136_s3, 1024, %s50_s30, [#allocation6], %s930_s19, %s930_s19, %s931_s20  }
  0x46   :  { %s877_s23 = scalar_lea.hbm %s1140_s7, 1024 }
  0x47   :  { %p878_p4 = scmp.ne.s32.totalorder %s1140_s7, %s877_s23  ;;  %p881_p5 = scmp.lt.u32.totalorder %s877_s23, %s1140_s7 }
  0x49   :  { %p883_p6 = pnand %p881_p5, %p878_p4 }
  0x4b   :  { %886 = shalt.err (!%p883_p6)
}
  0x4c   :  { %s887_s11 = scalar_lea.vmem %s78_s12, 1024  ;;  %p892_p8 = scmp.lt.s32.totalorder %s78_s12, %s78_s12 }
  0x4d   :  { %p888_p7 = scmp.ne.s32.totalorder %s78_s12, %s887_s11  ;;  %p893_p9 = scmp.lt.s32.totalorder %s887_s11, %s887_s11 }
  0x4f   :  { %p894_p10 = por %p893_p9, %p892_p8 }
  0x51   :  { %p895_p11 = pnand %p894_p10, %p888_p7 }
  0x53   :  { %898 = shalt.err (!%p895_p11)
}
  0x54   :  { %83 = dma.hbm_to_vmem [thread:$0]  %s1140_s7, 1024, %s78_s12, [#allocation9], %s930_s19, %s930_s19, %s931_s20  }
  0x55   :  { %921 = dma.done.wait [#allocation3], 256  }
  0x56   :  { %922 = vsyncadd [#allocation3], 4294967040 }
  0x57   :  { %923 = dma.done.wait [#allocation6], 2048  }
  0x58   :  { %924 = vsyncadd [#allocation6], 4294965248 }
  0x59   :  { %925 = dma.done.wait [#allocation9], 2048  }
  0x5a   :  { %926 = vsyncadd [#allocation9], 4294965248  ;;  %v938_v0 = vmov 0.0   ;;  %vm939_vm0 = vmmov 0   ;;  %v757_v1 = vld [vmem:[#allocation5] sm:$0xff]   ;;  %v758_v2 = vld [vmem:[#allocation5 + $0x8] sm:$0xff]  }
  0x5b   :  { %665 = vmatprep.subr.bf16.mxu0 %v938_v0  ;;  %681 = vmatprep.mubr.msk.bf16.mxu0 %vm939_vm0, %v938_v0  ;;  %v759_v3 = vld [vmem:[#allocation5 + $0x10] sm:$0xff]   ;;  %v765_v4 = vld [vmem:[#allocation7] sm:$0xff]   ;;  %v760_v5 = vld [vmem:[#allocation5 + $0x18] sm:$0xff]  }
  0x5c   :  { %685 = vmatprep.subr.bf16.mxu1 %v938_v0  ;;  %701 = vmatprep.mubr.msk.bf16.mxu1 %vm939_vm0, %v938_v0  ;;  %v766_v6 = vld [vmem:[#allocation7 + $0x8] sm:$0xff]   ;;  %v761_v7 = vld [vmem:[#allocation5 + $0x20] sm:$0xff]   ;;  %v767_v8 = vld [vmem:[#allocation7 + $0x10] sm:$0xff]  }
  0x5d   :  { %666 = vmatpush3.bf16.msra.mxu0 %v757_v1  ;;  %686 = vmatpush3.bf16.msra.mxu1 %v765_v4  ;;  %v762_v9 = vld [vmem:[#allocation5 + $0x28] sm:$0xff]   ;;  %v768_v10 = vld [vmem:[#allocation7 + $0x18] sm:$0xff]   ;;  %v763_v11 = vld [vmem:[#allocation5 + $0x30] sm:$0xff]  }
  0x5e   :  { %667 = vmatprep.subr.bf16.mxu0 %v938_v0  ;;  %687 = vmatprep.subr.bf16.mxu1 %v938_v0  ;;  %v769_v12 = vld [vmem:[#allocation7 + $0x20] sm:$0xff]   ;;  %v764_v13 = vld [vmem:[#allocation5 + $0x38] sm:$0xff]   ;;  %v102_v14 = vld [vmem:[#allocation2] sm:$0xff] }
  0x5f   :  { %v103_v15 = vld [vmem:[#allocation2 + $0x8] sm:$0xff]  ;;  %v770_v17 = vld [vmem:[#allocation7 + $0x28] sm:$0xff]   ;;  %v771_v18 = vld [vmem:[#allocation7 + $0x30] sm:$0xff]  }
  0x60   :  { %v104_v16 = vpack.c.bf16 %v103_v15, %v102_v14  ;;  %v772_v19 = vld [vmem:[#allocation7 + $0x38] sm:$0xff]   ;;  %v773_v20 = vld [vmem:[#allocation8] sm:$0xff]   ;;  %v774_v21 = vld [vmem:[#allocation8 + $0x8] sm:$0xff]  }
  0x61   :  { %668 = vmatpush3.bf16.msra.mxu0 %v758_v2  ;;  %688 = vmatpush3.bf16.msra.mxu1 %v766_v6  ;;  %v775_v22 = vld [vmem:[#allocation8 + $0x10] sm:$0xff]   ;;  %v776_v23 = vld [vmem:[#allocation8 + $0x18] sm:$0xff]   ;;  %v777_v24 = vld [vmem:[#allocation8 + $0x20] sm:$0xff]  }
  0x62   :  { %669 = vmatprep.subr.bf16.mxu0 %v938_v0  ;;  %689 = vmatprep.subr.bf16.mxu1 %v938_v0  ;;  %v593_v25 = vld [vmem:[%s1135_s2] ss:$0 sm:$0xff]  ;;  %v778_v37 = vld [vmem:[#allocation8 + $0x28] sm:$0xff]   ;;  %v780_v39 = vld [vmem:[#allocation8 + $0x38] sm:$0xff]  }
  0x63   :  { %v779_v38 = vld [vmem:[#allocation8 + $0x30] sm:$0xff]   ;;  %v781_v40 = vld [vmem:[#allocation10] sm:$0xff]   ;;  %v782_v41 = vld [vmem:[#allocation10 + $0x8] sm:$0xff]  }
  0x64   :  { %v783_v42 = vld [vmem:[#allocation10 + $0x10] sm:$0xff]   ;;  %v784_v43 = vld [vmem:[#allocation10 + $0x18] sm:$0xff]   ;;  %v785_v44 = vld [vmem:[#allocation10 + $0x20] sm:$0xff]  }
  0x65   :  { %670 = vmatpush3.bf16.msra.mxu0 %v759_v3  ;;  %690 = vmatpush3.bf16.msra.mxu1 %v767_v8  ;;  %v602_v45 = vld [vmem:[%s1137_s4] ss:$0 sm:$0xff]  ;;  %v786_v57 = vld [vmem:[#allocation10 + $0x28] sm:$0xff]   ;;  %v788_v59 = vld [vmem:[#allocation10 + $0x38] sm:$0xff]  }
  0x66   :  { %671 = vmatprep.subr.bf16.mxu0 %v938_v0  ;;  %691 = vmatprep.subr.bf16.mxu1 %v938_v0  ;;  %v787_v58 = vld [vmem:[#allocation10 + $0x30] sm:$0xff]  }
  0x67   :  { %v611_v60 = vld [vmem:[%s1139_s6] ss:$0 sm:$0xff]  ;;  %s940_s6 = smov [#allocation11]  }
  0x68   :  { %s579_s10 = sshll.u32 %s940_s6, 4  ;;  %s580_s10 = int_to_ptr.vmem [resolvable:$true] %s579_s10 }
  0x69   :  { %672 = vmatpush3.bf16.msra.mxu0 %v760_v5  ;;  %692 = vmatpush3.bf16.msra.mxu1 %v768_v10  ;;  %s899_s14 = scalar_lea.vmem %s580_s10, 256  ;;  %p904_p13 = scmp.lt.s32.totalorder %s580_s10, %s580_s10 }
  0x6a   :  { %673 = vmatprep.subr.bf16.mxu0 %v938_v0  ;;  %693 = vmatprep.subr.bf16.mxu1 %v938_v0  ;;  %p900_p12 = scmp.ne.s32.totalorder %s580_s10, %s899_s14  ;;  %p905_p0 = scmp.lt.s32.totalorder %s899_s14, %s899_s14 }
  0x6c   :  { %p906_p1 = por %p905_p0, %p904_p13 }
  0x6d   :  { %674 = vmatpush3.bf16.msra.mxu0 %v761_v7  ;;  %694 = vmatpush3.bf16.msra.mxu1 %v769_v12 }
  0x6e   :  { %675 = vmatprep.subr.bf16.mxu0 %v938_v0  ;;  %695 = vmatprep.subr.bf16.mxu1 %v938_v0  ;;  %p907_p2 = pnand %p906_p1, %p900_p12 }
  0x71   :  { %676 = vmatpush3.bf16.msra.mxu0 %v762_v9  ;;  %696 = vmatpush3.bf16.msra.mxu1 %v770_v17 }
  0x72   :  { %677 = vmatprep.subr.bf16.mxu0 %v938_v0  ;;  %697 = vmatprep.subr.bf16.mxu1 %v938_v0 }
  0x75   :  { %678 = vmatpush3.bf16.msra.mxu0 %v763_v11  ;;  %698 = vmatpush3.bf16.msra.mxu1 %v771_v18 }
  0x76   :  { %679 = vmatprep.subr.bf16.mxu0 %v938_v0  ;;  %699 = vmatprep.subr.bf16.mxu1 %v938_v0 }
  0x79   :  { %680 = vmatpush3.bf16.msra.mxu0 %v764_v13  ;;  %700 = vmatpush3.bf16.msra.mxu1 %v772_v19 }
  0x7a   :  { %705 = vmatprep.subr.bf16.mxu0 %v938_v0  ;;  %725 = vmatprep.subr.bf16.mxu1 %v938_v0 }
  0x7c   :  { %682 = vmatmul.mubr.bf16.vlgmr.msra.gmra.mrb[0].mxu0 %v104_v16 }
  0x7d   :  { %721 = vmatprep.mubr.msk.bf16.mxu0 %vm939_vm0, %v938_v0  ;;  %706 = vmatpush3.bf16.msra.mxu0 %v773_v20 }
  0x7e   :  { %707 = vmatprep.subr.bf16.mxu0 %v938_v0 }
  0x81   :  { %708 = vmatpush3.bf16.msra.mxu0 %v774_v21 }
  0x82   :  { %709 = vmatprep.subr.bf16.mxu0 %v938_v0 }
  0x85   :  { %710 = vmatpush3.bf16.msra.mxu0 %v775_v22 }
  0x86   :  { %711 = vmatprep.subr.bf16.mxu0 %v938_v0 }
  0x89   :  { %712 = vmatpush3.bf16.msra.mxu0 %v776_v23 }
  0x8a   :  { %713 = vmatprep.subr.bf16.mxu0 %v938_v0 }
  0x8d   :  { %714 = vmatpush3.bf16.msra.mxu0 %v777_v24 }
  0x8e   :  { %715 = vmatprep.subr.bf16.mxu0 %v938_v0 }
  0x91   :  { %716 = vmatpush3.bf16.msra.mxu0 %v778_v37 }
  0x92   :  { %717 = vmatprep.subr.bf16.mxu0 %v938_v0 }
  0x95   :  { %718 = vmatpush3.bf16.msra.mxu0 %v779_v38 }
  0x96   :  { %719 = vmatprep.subr.bf16.mxu0 %v938_v0 }
  0x99   :  { %720 = vmatpush3.bf16.msra.mxu0 %v780_v39 }
 0x14f   :  { %v210_v26 = vpop.f32.mrb[0].mxu0 }
 0x150   :  { %v211_v27 = vadd.f32 %v593_v25, %v210_v26  ;;  %v683_v28 = vpop.f32.mrb[1].mxu0 }
 0x151   :  { %v213_v29 = vpop.f32.mrb[2].mxu0 }
 0x152   :  { %v217_v30 = vmax.f32 %v211_v27, 0.0  ;;  %v214_v31 = vadd.f32 %v593_v25, %v213_v29  ;;  %v684_v32 = vpop.f32.mrb[3].mxu0 }
 0x154   :  { %v218_v33 = vmax.f32 %v214_v31, 0.0  ;;  %v219_v34 = vadd.f32 %v217_v30, %v102_v14 }
 0x156   :  { %v220_v35 = vadd.f32 %v218_v33, %v103_v15 }
 0x158   :  { %v221_v36 = vpack.c.bf16 %v220_v35, %v219_v34 }
 0x15a   :  { %702 = vmatmul.mubr.bf16.vlgmr.msra.gmra.mrb[0].mxu1 %v221_v36 }
 0x15b   :  { %741 = vmatprep.mubr.msk.bf16.mxu1 %vm939_vm0, %v938_v0  ;;  %726 = vmatpush3.bf16.msra.mxu1 %v781_v40 }
 0x15c   :  { %727 = vmatprep.subr.bf16.mxu1 %v938_v0 }
 0x15f   :  { %728 = vmatpush3.bf16.msra.mxu1 %v782_v41 }
 0x160   :  { %729 = vmatprep.subr.bf16.mxu1 %v938_v0 }
 0x163   :  { %730 = vmatpush3.bf16.msra.mxu1 %v783_v42 }
 0x164   :  { %731 = vmatprep.subr.bf16.mxu1 %v938_v0 }
 0x167   :  { %732 = vmatpush3.bf16.msra.mxu1 %v784_v43 }
 0x168   :  { %733 = vmatprep.subr.bf16.mxu1 %v938_v0 }
 0x16b   :  { %734 = vmatpush3.bf16.msra.mxu1 %v785_v44 }
 0x16c   :  { %735 = vmatprep.subr.bf16.mxu1 %v938_v0 }
 0x16f   :  { %736 = vmatpush3.bf16.msra.mxu1 %v786_v57 }
 0x170   :  { %737 = vmatprep.subr.bf16.mxu1 %v938_v0 }
 0x173   :  { %738 = vmatpush3.bf16.msra.mxu1 %v787_v58 }
 0x174   :  { %739 = vmatprep.subr.bf16.mxu1 %v938_v0  ;;  %v620_v0 = vld [vmem:[%s1141_s8] ss:$0 sm:$0xff] }
 0x177   :  { %740 = vmatpush3.bf16.msra.mxu1 %v788_v59 }
 0x22d   :  { %v327_v46 = vpop.f32.mrb[0].mxu1 }
 0x22e   :  { %v328_v47 = vadd.f32 %v602_v45, %v327_v46  ;;  %v703_v48 = vpop.f32.mrb[1].mxu1 }
 0x22f   :  { %v330_v49 = vpop.f32.mrb[2].mxu1 }
 0x230   :  { %v334_v50 = vmax.f32 %v328_v47, 0.0  ;;  %v331_v51 = vadd.f32 %v602_v45, %v330_v49  ;;  %v704_v52 = vpop.f32.mrb[3].mxu1 }
 0x232   :  { %v335_v53 = vmax.f32 %v331_v51, 0.0  ;;  %v336_v54 = vadd.f32 %v334_v50, %v219_v34 }
 0x234   :  { %v337_v55 = vadd.f32 %v335_v53, %v220_v35 }
 0x236   :  { %v338_v56 = vpack.c.bf16 %v337_v55, %v336_v54 }
 0x238   :  { %722 = vmatmul.mubr.bf16.vlgmr.msra.gmra.mrb[4].mxu0 %v338_v56 }
 0x30b   :  { %v444_v61 = vpop.f32.mrb[4].mxu0 }
 0x30c   :  { %v445_v62 = vadd.f32 %v611_v60, %v444_v61  ;;  %v723_v63 = vpop.f32.mrb[5].mxu0 }
 0x30d   :  { %v447_v1 = vpop.f32.mrb[6].mxu0 }
 0x30e   :  { %v451_v2 = vmax.f32 %v445_v62, 0.0  ;;  %v448_v3 = vadd.f32 %v611_v60, %v447_v1  ;;  %v724_v4 = vpop.f32.mrb[7].mxu0 }
 0x310   :  { %v452_v5 = vmax.f32 %v448_v3, 0.0  ;;  %v453_v6 = vadd.f32 %v451_v2, %v336_v54 }
 0x312   :  { %v454_v7 = vadd.f32 %v452_v5, %v337_v55 }
 0x314   :  { %v455_v8 = vpack.c.bf16 %v454_v7, %v453_v6 }
 0x316   :  { %742 = vmatmul.mubr.bf16.vlgmr.msra.gmra.mrb[4].mxu1 %v455_v8 }
 0x3e9   :  { %v561_v9 = vpop.f32.mrb[4].mxu1 }
 0x3ea   :  { %v562_v10 = vadd.f32 %v620_v0, %v561_v9  ;;  %v743_v11 = vpop.f32.mrb[5].mxu1 }
 0x3eb   :  { %v564_v12 = vpop.f32.mrb[6].mxu1 }
 0x3ec   :  { %v568_v13 = vmax.f32 %v562_v10, 0.0  ;;  %v565_v14 = vadd.f32 %v620_v0, %v564_v12  ;;  %v744_v15 = vpop.f32.mrb[7].mxu1 }
 0x3ee   :  { %v570_v16 = vadd.f32 %v568_v13, %v453_v6  ;;  %v569_v17 = vmax.f32 %v565_v14, 0.0 }
 0x3f0   :  { %572 = vst [vmem:[#allocation11] sm:$0xff] %v570_v16  ;;  %v571_v18 = vadd.f32 %v569_v17, %v454_v7 }
 0x3f2   :  { %573 = vst [vmem:[#allocation11 + $0x8] sm:$0xff] %v571_v18 }
 0x3f3   :  { %910 = shalt.err (!%p907_p2)
}
 0x3f4   :  { %s911_s16 = scalar_lea.hbm %s1142_s9, 256 }
 0x3f5   :  { %p912_p3 = scmp.ne.s32.totalorder %s1142_s9, %s911_s16  ;;  %p915_p4 = scmp.lt.u32.totalorder %s911_s16, %s1142_s9 }
 0x3f7   :  { %p917_p5 = pnand %p915_p4, %p912_p3 }
 0x3f9   :  { %920 = shalt.err (!%p917_p5)
}
 0x3fa   :  { %585 = dma.vmem_to_hbm [thread:$0]  %s580_s10, 256, %s1142_s9, [#allocation4], %s934_s5, %s934_s5, %s935_s24  }
 0x3fb   :  { %927 = dma.done.wait [#allocation4], 256  }
 0x3fc   :  { %928 = vsyncadd [#allocation4], 4294967040 }
 0x3fd   :  { %589 = vsyncpa [#allocation3], 1 }
 0x3fe   :  { %590 = vsyncpa [#allocation6], 1 }
 0x3ff   :  { %591 = vsyncpa [#allocation9], 1 }
 0x400   :  { %592 = vsyncpa [#allocation4], 1 }

</bundles_post_ra>
